<compile_context>
chip_gen: v7x
topology: tpu7x:2x2x1
jax: 0.10.0
libtpu: 0.0.40
codegen_flags: <defaults>
</compile_context>

<pallas_src>
import functools

import jax
import jax.numpy as jnp
from jax.experimental import pallas as pl
from jax.experimental.pallas import tpu as pltpu


def _round_up(a, b):
    return (a + b - 1) // b * b


# ---------------------------------------------------------------------------
# Pass 1: conv (single MXU matmul per tile) + per-tile per-channel stats.
# ---------------------------------------------------------------------------
def conv_stats_kernel(p_ref, w_ref, y_ref, sum_ref, ssq_ref):
    acc = jnp.dot(p_ref[...], w_ref[...], preferred_element_type=jnp.float32)
    y_ref[...] = acc
    # fp32 sum / sum-of-squares accumulators (see numerics note in wrapper).
    sum_ref[0] = jnp.sum(acc, axis=0, keepdims=True)
    ssq_ref[0] = jnp.sum(acc * acc, axis=0, keepdims=True)


# ---------------------------------------------------------------------------
# Pass 2: normalize (single FMA with precomputed scale/shift) + LeakyReLU.
# ---------------------------------------------------------------------------
def bn_leaky_kernel(y_ref, scale_ref, shift_ref, o_ref, *, neg_slope):
    out = y_ref[...] * scale_ref[...] + shift_ref[...]
    o_ref[...] = jnp.where(out >= 0, out, neg_slope * out)


def cnn_block(x_nchw, w_oihw, gamma, beta, bias=None, *, stride=1, padding=1,
              use_bn=True, eps=1e-5, neg_slope=0.1, tile_m=256,
              matmul_dtype=jnp.float32):
    N, Cin, H, W = x_nchw.shape
    Cout, Cin2, KH, KW = w_oihw.shape
    assert Cin == Cin2
    Ho = (H + 2 * padding - KH) // stride + 1
    Wo = (W + 2 * padding - KW) // stride + 1
    K = KH * KW * Cin
    Cp = _round_up(Cout, 128)          # lane-dense channel dim
    M = N * Ho * Wo                    # real output rows (N*Ho*Wo)

    # ---- glue (plain JAX): layout, pad, im2col, weight folding --------------
    x_nhwc = jnp.transpose(x_nchw, (0, 2, 3, 1)).astype(jnp.float32)
    x_pad = jnp.pad(x_nhwc,
                    ((0, 0), (padding, padding), (padding, padding), (0, 0)))
    cols = []
    for i in range(KH):
        for j in range(KW):
            cols.append(x_pad[:, i:i + (Ho - 1) * stride + 1:stride,
                              j:j + (Wo - 1) * stride + 1:stride, :])
    patches = jnp.concatenate(cols, axis=-1).reshape(M, K)   # (kh, kw, cin)

    tile_m = min(tile_m, _round_up(M, 8))
    M_pad = _round_up(M, tile_m)
    if M_pad != M:
        # Zero rows: contribute 0 to sum / sumsq, sliced off at the end.
        patches = jnp.pad(patches, ((0, M_pad - M), (0, 0)))
    num_tiles = M_pad // tile_m

    w_folded = jnp.transpose(w_oihw, (2, 3, 1, 0)).reshape(K, Cout)
    w_folded = jnp.pad(w_folded, ((0, 0), (0, Cp - Cout)))

    patches = patches.astype(matmul_dtype)
    w_folded = w_folded.astype(matmul_dtype)

    # ---- pass 1: conv + partial stats ---------------------------------------
    elt = jnp.dtype(matmul_dtype).itemsize
    vmem1 = (2 * tile_m * K * elt          # double-buffered patch tiles
             + 2 * K * Cp * elt            # weight block
             + 2 * tile_m * Cp * 4         # double-buffered conv output tile
             + 4 * 2 * Cp * 4)             # tiny stats outputs
    vmem1 = int(min(max(3 * vmem1, 16 * 2**20), 48 * 2**20))

    conv_out, psum, pssq = pl.pallas_call(
        conv_stats_kernel,
        grid=(num_tiles,),
        in_specs=[
            pl.BlockSpec((tile_m, K), lambda i: (i, 0)),
            pl.BlockSpec((K, Cp), lambda i: (0, 0)),
        ],
        out_specs=(
            pl.BlockSpec((tile_m, Cp), lambda i: (i, 0)),
            pl.BlockSpec((1, 1, Cp), lambda i: (i, 0, 0)),
            pl.BlockSpec((1, 1, Cp), lambda i: (i, 0, 0)),
        ),
        out_shape=(
            jax.ShapeDtypeStruct((M_pad, Cp), jnp.float32),
            jax.ShapeDtypeStruct((num_tiles, 1, Cp), jnp.float32),
            jax.ShapeDtypeStruct((num_tiles, 1, Cp), jnp.float32),
        ),
        compiler_params=pltpu.CompilerParams(
            dimension_semantics=("parallel",),
            vmem_limit_bytes=vmem1),
    )(patches, w_folded)

    # ---- per-channel scale/shift (tiny, plain JAX) ---------------------------
    if use_bn:
        # NOTE: sum/sum-of-squares kept in fp32; var clamped at 0 to guard the
        # E[x^2]-mean^2 cancellation (fine at these magnitudes/counts).
        count = jnp.float32(M)
        total_sum = jnp.sum(psum, axis=0)[0]      # (Cp,)
        total_ssq = jnp.sum(pssq, axis=0)[0]      # (Cp,)
        mean = total_sum / count
        var = jnp.maximum(total_ssq / count - mean * mean, 0.0)
        inv = jax.lax.rsqrt(var + eps)
        gamma_p = jnp.pad(gamma.astype(jnp.float32), (0, Cp - Cout))
        beta_p = jnp.pad(beta.astype(jnp.float32), (0, Cp - Cout))
        scale = (gamma_p * inv).reshape(1, Cp)
        shift = (beta_p - mean * gamma_p * inv).reshape(1, Cp)
        slope = neg_slope
    else:
        # Conv-only path (bias, no BN, no non-linearity): scale=1, shift=bias,
        # slope=1.0 turns the leaky select into an identity.
        b = jnp.zeros((Cout,), jnp.float32) if bias is None else bias
        scale = jnp.ones((1, Cp), jnp.float32)
        shift = jnp.pad(b.astype(jnp.float32), (0, Cp - Cout)).reshape(1, Cp)
        slope = 1.0

    # ---- pass 2: normalize + LeakyReLU (lane-dense elementwise) --------------
    vmem2 = int(min(max(3 * (4 * tile_m * Cp * 4 + 4 * Cp * 4), 16 * 2**20),
                    48 * 2**20))
    out = pl.pallas_call(
        functools.partial(bn_leaky_kernel, neg_slope=slope),
        grid=(num_tiles,),
        in_specs=[
            pl.BlockSpec((tile_m, Cp), lambda i: (i, 0)),
            pl.BlockSpec((1, Cp), lambda i: (0, 0)),
            pl.BlockSpec((1, Cp), lambda i: (0, 0)),
        ],
        out_specs=pl.BlockSpec((tile_m, Cp), lambda i: (i, 0)),
        out_shape=jax.ShapeDtypeStruct((M_pad, Cp), jnp.float32),
        compiler_params=pltpu.CompilerParams(
            dimension_semantics=("parallel",),
            vmem_limit_bytes=vmem2),
    )(conv_out, scale, shift)

    out = out[:M, :Cout].reshape(N, Ho, Wo, Cout)
    return jnp.transpose(out, (0, 3, 1, 2))   # back to NCHW


# TODO(synk): BatchNorm running-mean/var bookkeeping (module state update) is
# not modeled; this implements the training-mode forward math only.
def _reference(x, w, gamma, beta, *, padding=1, eps=1e-5, neg_slope=0.1):
    y = jax.lax.conv_general_dilated(
        x, w, window_strides=(1, 1),
        padding=((padding, padding), (padding, padding)),
        dimension_numbers=("NCHW", "OIHW", "NCHW"))
    mean = y.mean(axis=(0, 2, 3), keepdims=True)
    var = y.var(axis=(0, 2, 3), keepdims=True)
    yhat = (y - mean) / jnp.sqrt(var + eps)
    out = yhat * gamma.reshape(1, -1, 1, 1) + beta.reshape(1, -1, 1, 1)
    return jnp.where(out >= 0, out, neg_slope * out)


if __name__ == "__main__":
    key = jax.random.PRNGKey(0)
    kx, kw, kg, kb = jax.random.split(key, 4)

    N, CIN, COUT, H, W, KSZ = 2, 4, 8, 16, 16, 3

    x = jax.random.normal(kx, (N, CIN, H, W), dtype=jnp.float32)
    # Conv2d(in=4, out=8, kernel_size=3, padding=1, bias=False since use_bn=True)
    w = jax.random.normal(kw, (COUT, CIN, KSZ, KSZ), dtype=jnp.float32) * 0.1
    # BatchNorm2d(8) affine params (deterministic synthetic init).
    gamma = 1.0 + 0.1 * jax.random.normal(kg, (COUT,), dtype=jnp.float32)
    beta = 0.1 * jax.random.normal(kb, (COUT,), dtype=jnp.float32)

    out = cnn_block(x, w, gamma, beta, padding=1)
    out = jax.block_until_ready(out)

    ref = _reference(x, w, gamma, beta, padding=1)
    assert out.shape == ref.shape == (N, COUT, H, W)
    assert jnp.allclose(out, ref, atol=1e-4, rtol=1e-4), (
        float(jnp.max(jnp.abs(out - ref))))

    print("KERNEL_OK")
</pallas_src>

<mosaic_0001>
module attributes {stable_mosaic.version = 11 : i64} {
  func.func @conv_stats_kernel(%arg0: i32, %arg1: memref<256x36xf32, #tpu.memory_space<vmem>>, %arg2: memref<36x128xf32, #tpu.memory_space<vmem>>, %arg3: memref<256x128xf32, #tpu.memory_space<vmem>>, %arg4: memref<1x1x128xf32, #tpu.memory_space<vmem>>, %arg5: memref<1x1x128xf32, #tpu.memory_space<vmem>>) attributes {dimension_semantics = [#tpu.dimension_semantics<parallel>], iteration_bounds = array<i64: 2>, scalar_prefetch = 0 : i64, scratch_operands = 0 : i64, tpu.core_type = #tpu.core_type<tc>, window_params = [{transform_indices = @transform_0, window_bounds = array<i64: 256, 36>}, {pipeline_mode = #tpu.pipeline_mode<synchronous>, transform_indices = @transform_1, window_bounds = array<i64: 36, 128>}, {transform_indices = @transform_2, window_bounds = array<i64: 256, 128>}, {transform_indices = @transform_3, window_bounds = array<i64: 1, 1, 128>}, {transform_indices = @transform_4, window_bounds = array<i64: 1, 1, 128>}]} {
    %c0 = arith.constant 0 : index
    %c0_0 = arith.constant 0 : index
    %0 = vector.load %arg1[%c0, %c0_0] : memref<256x36xf32, #tpu.memory_space<vmem>>, vector<256x36xf32>
    %c0_1 = arith.constant 0 : index
    %c0_2 = arith.constant 0 : index
    %1 = vector.load %arg2[%c0_1, %c0_2] : memref<36x128xf32, #tpu.memory_space<vmem>>, vector<36x128xf32>
    %cst = arith.constant dense<0.000000e+00> : vector<256x128xf32>
    %2 = tpu.matmul %0, %1, %cst {dimension_numbers = #tpu.dot_dimension_numbers<[1], [0], [0], [1], [0, 0, 1, 1], [], []>} : vector<256x36xf32>, vector<36x128xf32>, vector<256x128xf32> -> vector<256x128xf32>
    %c0_3 = arith.constant 0 : index
    %c0_4 = arith.constant 0 : index
    %3 = vector.load %arg3[%c0_3, %c0_4] : memref<256x128xf32, #tpu.memory_space<vmem>>, vector<256x128xf32>
    tpu.vector_store %arg3[%c0_3, %c0_4], %2 {strides = array<i32>} : memref<256x128xf32, #tpu.memory_space<vmem>>, vector<256x128xf32>,
    %cst_5 = arith.constant dense<0.000000e+00> : vector<128xf32>
    %4 = vector.multi_reduction <add>, %2, %cst_5 [0] : vector<256x128xf32> to vector<128xf32>
    %5 = vector.shape_cast %4 : vector<128xf32> to vector<1x128xf32>
    %c0_6 = arith.constant 0 : index
    %c0_7 = arith.constant 0 : index
    %c0_8 = arith.constant 0 : index
    %6 = vector.load %arg4[%c0_6, %c0_7, %c0_8] : memref<1x1x128xf32, #tpu.memory_space<vmem>>, vector<1x1x128xf32>
    %7 = vector.shape_cast %6 : vector<1x1x128xf32> to vector<1x128xf32>
    %8 = vector.shape_cast %5 : vector<1x128xf32> to vector<1x1x128xf32>
    tpu.vector_store %arg4[%c0_6, %c0_7, %c0_8], %8 {strides = array<i32>} : memref<1x1x128xf32, #tpu.memory_space<vmem>>, vector<1x1x128xf32>,
    %9 = arith.mulf %2, %2 : vector<256x128xf32>
    %cst_9 = arith.constant dense<0.000000e+00> : vector<128xf32>
    %10 = vector.multi_reduction <add>, %9, %cst_9 [0] : vector<256x128xf32> to vector<128xf32>
    %11 = vector.shape_cast %10 : vector<128xf32> to vector<1x128xf32>
    %c0_10 = arith.constant 0 : index
    %c0_11 = arith.constant 0 : index
    %c0_12 = arith.constant 0 : index
    %12 = vector.load %arg5[%c0_10, %c0_11, %c0_12] : memref<1x1x128xf32, #tpu.memory_space<vmem>>, vector<1x1x128xf32>
    %13 = vector.shape_cast %12 : vector<1x1x128xf32> to vector<1x128xf32>
    %14 = vector.shape_cast %11 : vector<1x128xf32> to vector<1x1x128xf32>
    tpu.vector_store %arg5[%c0_10, %c0_11, %c0_12], %14 {strides = array<i32>} : memref<1x1x128xf32, #tpu.memory_space<vmem>>, vector<1x1x128xf32>,
    return
  }
  func.func @transform_0(%arg0: i32) -> (i32, i32) {
    %c0_i32 = arith.constant 0 : i32
    %c0_i32_0 = arith.constant 0 : i32
    return %arg0, %c0_i32 : i32, i32
  }
  func.func @transform_1(%arg0: i32) -> (i32, i32) {
    %c0_i32 = arith.constant 0 : i32
    %c0_i32_0 = arith.constant 0 : i32
    %c0_i32_1 = arith.constant 0 : i32
    return %c0_i32, %c0_i32_0 : i32, i32
  }
  func.func @transform_2(%arg0: i32) -> (i32, i32) {
    %c0_i32 = arith.constant 0 : i32
    %c0_i32_0 = arith.constant 0 : i32
    return %arg0, %c0_i32 : i32, i32
  }
  func.func @transform_3(%arg0: i32) -> (i32, i32, i32) {
    %c0_i32 = arith.constant 0 : i32
    %c0_i32_0 = arith.constant 0 : i32
    %c0_i32_1 = arith.constant 0 : i32
    return %arg0, %c0_i32, %c0_i32_0 : i32, i32, i32
  }
  func.func @transform_4(%arg0: i32) -> (i32, i32, i32) {
    %c0_i32 = arith.constant 0 : i32
    %c0_i32_0 = arith.constant 0 : i32
    %c0_i32_1 = arith.constant 0 : i32
    return %arg0, %c0_i32, %c0_i32_0 : i32, i32, i32
  }
}

</mosaic_0001>

<bundles_post_ra>
// kernel: tpu_custom_call.1
= control target key start
LH: loop header
LB: loop body
LE: loop exit
PB: predicated region body
PF: predicated region fallthrough
CT: control target
= control target key end

     0   :  { %10 = vsyncpa [#allocation3], 0  ;;  %s1632_s0 = inlined_call_operand.vmem [shape: f32[512,36], index: 0, kind: input, shape index: {}]   ;;  %s1633_s1 = inlined_call_operand.vmem [shape: f32[36,128], index: 1, kind: input, shape index: {}]   ;;  %s1634_s2 = inlined_call_operand.hbm [shape: f32[512,128], index: 2, kind: output, shape index: {0}]   ;;  %s1635_s3 = inlined_call_operand.hbm [shape: f32[2,1,128], index: 3, kind: output, shape index: {1}]   ;;  %s1636_s4 = inlined_call_operand.hbm [shape: f32[2,1,128], index: 4, kind: output, shape index: {2}]  }
   0x1   :  { %12 = vsyncpa [#allocation3 + $0x1], 0 }
   0x2   :  { %13 = vsyncpa [#allocation5], 0 }
   0x3   :  { %15 = vsyncpa [#allocation5 + $0x1], 0  ;;  %s1243_s15 = smov 0   ;;  %s1245_s16 = smov 0  }
   0x4   :  { %s1247_s17 = smov 0   ;;  %s1249_s18 = smov 0  }
   0x5 LB: > { %s1264_s19 = sadd.s32 4294967295, %s1211_s18   ;;  %s881_s20 = sadd.s32 4294967294, %s1211_s18   ;;  %s1211_s18 = sphi %s1249_s18, %s1642_s18   ;;  %s1207_s17 = sphi %s1247_s17, %s1641_s17   ;;  %s1203_s16 = sphi %s1245_s16, %s1640_s16   ;;  %s1199_s15 = sphi %s1243_s15, %s1639_s15  }
   0x6   : > { %s1268_s21 = sadd.s32 1, %s1211_s18   ;;  %s75_s22 = sadd.s32 1, %s1207_s17 }
   0x7   : > { %s72_s23 = ssub.s32 %s1211_s18, %s1268_s21  ;;  %p85_p0 = scmp.ne.s32.totalorder %s1207_s17, %s1203_s16 }
   0x8   : > { %p73_p1 = scmp.eq.s32.totalorder %s72_s23, 0  ;;  %p86_p2 = scmp.eq.s32.totalorder %s1264_s19, 1 }
   0x9   : > { %p91_p3 = scmp.ne.s32.totalorder %s1203_s16, %s1199_s15  ;;  %p92_p4 = scmp.eq.s32.totalorder %s881_s20, 1 }
   0xa   : > { %s1281_s24 = scalar_select %p73_p1, %s1207_s17, %s75_s22  }
   0xb   : > { %p1283_p5 = por %p86_p2, %p85_p0  ;;  %p1287_p6 = por %p92_p4, %p91_p3 }
   0xc   : > { %p884_p7 = scmp.ge.s32.totalorder %s1211_s18, 1  ;;  %p174_p8 = scmp.lt.s32.totalorder %s1211_s18, 3 }
   0xe   : > { %p175_p9 = pnand %p884_p7, %p174_p8 }
   0xf   : > { %v247_v0 = vld [vmem:[%s1633_s1] sm:$0xff] (!%p175_p9)  ;;  %v248_v1 = vld [vmem:[%s1633_s1 + $0x8] sm:$0xff] (!%p175_p9)  ;;  %v249_v2 = vld [vmem:[%s1633_s1 + $0x10] sm:$0xff] (!%p175_p9)  ;;  %s886_s7 = sshll.u32 (!%p175_p9), %s1264_s19, 5  ;;  %vm252_vm0 = vcmask (!%p175_p9), 293888   ;;  %vm349_vm1 = vcmask (!%p175_p9), 1043456  }
  0x10   : > { %178 = sbr.rel (%p175_p9) target bundleno = 364 (0x16c), region = 28  ;;  %v1024_v3 = vpack.c.bf16 (!%p175_p9), %v248_v1, %v247_v0  ;;  %v250_v4 = vld [vmem:[%s1633_s1 + $0x18] sm:$0xff] (!%p175_p9)  ;;  %p209_p10 = scmp.lt.s32.totalorder (!%p175_p9), %s886_s7, 63  ;;  %v251_v6 = vld [vmem:[%s1633_s1 + $0x20] sm:$0xf] (!%p175_p9) }
  0x11   : > { %v1028_v5 = vpack.c.bf16 (!%p175_p9), %v250_v4, %v249_v2  ;;  %s1379_s23 = sand.u32 (!%p175_p9), 1, %s1203_s16   ;;  %s928_s29 = sshll.u32 (!%p175_p9), %s1264_s19, 12 }
  0x12   : > { %1025 = vmatprep.subr.bf16.mxu0 (!%p175_p9), %v1024_v3  ;;  %1032 = vmatprep.subr.bf16.mxu1 (!%p175_p9), %v1024_v3  ;;  %s885_s27 = sshll.u32 (!%p175_p9), %s1379_s23, 8  ;;  %s719_s8 = scalar_lea.sflag (!%p175_p9), [#allocation3], %s1379_s23 }
  0x13   : > { %1027 = vmatpush3.bf16.msra.mxu0 (!%p175_p9), %v1024_v3  ;;  %1035 = vmatpush3.bf16.msra.mxu1 (!%p175_p9), %v1024_v3  ;;  %s1382_s28 = scalar_lea.vmem (!%p175_p9), [#allocation2], %s885_s27 }
  0x14   : > { %1029 = vmatprep.subr.bf16.mxu0 (!%p175_p9), %v1028_v5  ;;  %1033 = vmatprep.subr.bf16.mxu1 (!%p175_p9), %v1028_v5  ;;  %s740_s30 = sshll.u32 (!%p175_p9), %s1382_s28, 4  ;;  %s1462_s30 = int_to_ptr.vmem [resolvable:$true] %s740_s30 }
  0x15   : > { %s1089_s9 = scalar_lea.vmem (!%p175_p9), %s1462_s30, 4096 }
  0x16   : > { %p1090_p11 = scmp.ne.s32.totalorder (!%p175_p9), %s1462_s30, %s1089_s9 }
  0x17   : > { %s1644_s7 = smov (!%p209_p10, %s886_s7), 63  ;;  %1031 = vmatpush3.bf16.msra.mxu0 %v1028_v5  ;;  %1036 = vmatpush3.bf16.msra.mxu1 %v1028_v5 }
  0x18   : > { %s887_s10 = sshll.u32 %s1644_s7, 3  ;;  %974 = vmatprep.subr.msk.mxu0 %vm349_vm1, %v251_v6  ;;  %1034 = vmatprep.subr.msk.mxu1 %vm349_vm1, %v251_v6  ;;  %s1460_s7 = scalar_lea.hbm %s1634_s2, %s928_s29 }
  0x19   : > { %s1312_s22 = scalar_lea.vmem %s1632_s0, %s887_s10  ;;  %p1091_p12 = pnand %p1090_p11, %p1283_p5 }
  0x1a   : > { %v215_v7 = vld [vmem:[%s1312_s22] sm:$0xff]  ;;  %v216_v8 = vld [vmem:[%s1312_s22 + $0x8] sm:$0xff]  ;;  %v217_v9 = vld [vmem:[%s1312_s22 + $0x10] sm:$0xff]  ;;  %s1213_s10 = smov [#allocation2]  }
  0x1b   : > { %976 = vmatprep.mubr.msk.f32.mxu0 %vm252_vm0, %v215_v7  ;;  %975 = vmatpush3.msk.msra.mxu0 %vm349_vm1, %v251_v6  ;;  %v231_v10 = vld [vmem:[%s1312_s22 + $0x80] sm:$0xff]  ;;  %v232_v11 = vld [vmem:[%s1312_s22 + $0x88] sm:$0xff]  ;;  %v233_v12 = vld [vmem:[%s1312_s22 + $0x90] sm:$0xff]  ;;  %p1092_p13 = pneg %p1091_p12  ;;  %s1093_s11 = sshll.u32 %s1213_s10, 4  ;;  %s1094_s11 = int_to_ptr.vmem [resolvable:$false] %s1093_s11 }
  0x1c   : > { %977 = vmatmul.mubr.msk.f32.vlgmr.msra.gmra.mrb[0].mxu0 %vm252_vm0, %v216_v8  ;;  %1037 = vmatpush3.msk.msra.mxu1 %vm349_vm1, %v251_v6  ;;  %v218_v13 = vld [vmem:[%s1312_s22 + $0x18] sm:$0xff]  ;;  %v219_v14 = vld [vmem:[%s1312_s22 + $0x20] sm:$0xff]  ;;  %v220_v17 = vld [vmem:[%s1312_s22 + $0x28] sm:$0xff]  ;;  %s1095_s12 = scalar_lea.vmem %s1094_s11, 8192  ;;  %p1096_p0 = scmp.lt.s32.totalorder %s1462_s30, %s1094_s11 }
  0x1d   : > { %979 = vmatprep.mubr.msk.f32.mxu0 %vm252_vm0, %v217_v9  ;;  %1000 = vmatprep.mubr.msk.f32.mxu1 %vm252_vm0, %v231_v10  ;;  %v234_v15 = vld [vmem:[%s1312_s22 + $0x98] sm:$0xff]  ;;  %v235_v16 = vld [vmem:[%s1312_s22 + $0xa0] sm:$0xff]  ;;  %v221_v18 = vld [vmem:[%s1312_s22 + $0x30] sm:$0xff]  ;;  %p1097_p1 = scmp.lt.s32.totalorder %s1095_s12, %s1089_s9 }
  0x1e   : > { %1001 = vmatmul.mubr.msk.f32.vlgmr.msra.gmra.mrb[0].mxu1 %vm252_vm0, %v232_v11  ;;  %v236_v19 = vld [vmem:[%s1312_s22 + $0xa8] sm:$0xff]  ;;  %v237_v20 = vld [vmem:[%s1312_s22 + $0xb0] sm:$0xff]  ;;  %v222_v21 = vld [vmem:[%s1312_s22 + $0x38] sm:$0xff] }
  0x1f   : > { %1003 = vmatprep.mubr.msk.f32.mxu1 %vm252_vm0, %v233_v12  ;;  %v223_v22 = vld [vmem:[%s1312_s22 + $0x40] sm:$0xff]  ;;  %v238_v23 = vld [vmem:[%s1312_s22 + $0xb8] sm:$0xff]  ;;  %v224_v25 = vld [vmem:[%s1312_s22 + $0x48] sm:$0xff]  ;;  %p1098_p2 = por %p1097_p1, %p1096_p0 }
  0x20   : > { %980 = vmatmul.mubr.msk.f32.gmra.mrb[2].mxu0 %vm252_vm0, %v218_v13  ;;  %v239_v24 = vld [vmem:[%s1312_s22 + $0xc0] sm:$0xff]  ;;  %v225_v26 = vld [vmem:[%s1312_s22 + $0x50] sm:$0xff]  ;;  %v240_v27 = vld [vmem:[%s1312_s22 + $0xc8] sm:$0xff] }
  0x21   : > { %982 = vmatprep.mubr.msk.f32.mxu0 %vm252_vm0, %v219_v14  ;;  %v241_v28 = vld [vmem:[%s1312_s22 + $0xd0] sm:$0xff]  ;;  %v226_v29 = vld [vmem:[%s1312_s22 + $0x58] sm:$0xff]  ;;  %v227_v30 = vld [vmem:[%s1312_s22 + $0x60] sm:$0xff]  ;;  %p1099_p3 = pnand %p1098_p2, %p1092_p13 }
  0x22   : > { %1004 = vmatmul.mubr.msk.f32.gmra.mrb[2].mxu1 %vm252_vm0, %v234_v15  ;;  %v242_v31 = vld [vmem:[%s1312_s22 + $0xd8] sm:$0xff]  ;;  %v243_v32 = vld [vmem:[%s1312_s22 + $0xe0] sm:$0xff]  ;;  %v228_v33 = vld [vmem:[%s1312_s22 + $0x68] sm:$0xff] }
  0x23   : > { %1006 = vmatprep.mubr.msk.f32.mxu1 %vm252_vm0, %v235_v16  ;;  %v229_v34 = vld [vmem:[%s1312_s22 + $0x70] sm:$0xff]  ;;  %v244_v35 = vld [vmem:[%s1312_s22 + $0xe8] sm:$0xff]  ;;  %v230_v37 = vld [vmem:[%s1312_s22 + $0x78] sm:$0xff] }
  0x24   : > { %983 = vmatmul.mubr.msk.f32.gmra.mrb[4].mxu0 %vm252_vm0, %v220_v17  ;;  %v245_v36 = vld [vmem:[%s1312_s22 + $0xf0] sm:$0xff]  ;;  %v246_v38 = vld [vmem:[%s1312_s22 + $0xf8] sm:$0xff] }
  0x25   : > { %985 = vmatprep.mubr.msk.f32.mxu0 %vm252_vm0, %v221_v18 }
  0x26   : > { %1007 = vmatmul.mubr.msk.f32.gmra.mrb[4].mxu1 %vm252_vm0, %v236_v19 }
  0x27   : > { %1009 = vmatprep.mubr.msk.f32.mxu1 %vm252_vm0, %v237_v20 }
  0x28   : > { %986 = vmatmul.mubr.msk.f32.gmra.mrb[6].mxu0 %vm252_vm0, %v222_v21 }
  0x29   : > { %988 = vmatprep.mubr.msk.f32.mxu0 %vm252_vm0, %v223_v22 }
  0x2a   : > { %1010 = vmatmul.mubr.msk.f32.gmra.mrb[6].mxu1 %vm252_vm0, %v238_v23 }
  0x2b   : > { %1012 = vmatprep.mubr.msk.f32.mxu1 %vm252_vm0, %v239_v24 }
  0x2c   : > { %989 = vmatmul.mubr.msk.f32.gmra.mrb[8].mxu0 %vm252_vm0, %v224_v25 }
  0x2d   : > { %991 = vmatprep.mubr.msk.f32.mxu0 %vm252_vm0, %v225_v26 }
  0x2e   : > { %1013 = vmatmul.mubr.msk.f32.gmra.mrb[8].mxu1 %vm252_vm0, %v240_v27 }
  0x2f   : > { %1015 = vmatprep.mubr.msk.f32.mxu1 %vm252_vm0, %v241_v28 }
  0x30   : > { %992 = vmatmul.mubr.msk.f32.gmra.mrb[10].mxu0 %vm252_vm0, %v226_v29 }
  0x31   : > { %994 = vmatprep.mubr.msk.f32.mxu0 %vm252_vm0, %v227_v30 }
  0x32   : > { %1016 = vmatmul.mubr.msk.f32.gmra.mrb[10].mxu1 %vm252_vm0, %v242_v31 }
  0x33   : > { %1018 = vmatprep.mubr.msk.f32.mxu1 %vm252_vm0, %v243_v32 }
  0x34   : > { %995 = vmatmul.mubr.msk.f32.gmra.mrb[12].mxu0 %vm252_vm0, %v228_v33 }
  0x35   : > { %997 = vmatprep.mubr.msk.f32.mxu0 %vm252_vm0, %v229_v34 }
  0x36   : > { %1019 = vmatmul.mubr.msk.f32.gmra.mrb[12].mxu1 %vm252_vm0, %v244_v35 }
  0x37   : > { %1021 = vmatprep.mubr.msk.f32.mxu1 %vm252_vm0, %v245_v36 }
  0x38   : > { %998 = vmatmul.mubr.msk.f32.gmra.mrb[14].mxu0 %vm252_vm0, %v230_v37 }
  0x3a   : > { %1022 = vmatmul.mubr.msk.f32.gmra.mrb[14].mxu1 %vm252_vm0, %v246_v38 }
  0xef   : > { %v978_v39 = vpop.f32.mrb[0].mxu0 }
  0xf0   : > { %579 = vst [vmem:[%s1382_s28 + $0x8] sm:$0xff] %v978_v39  ;;  %v649_v40 = vmul.f32 %v978_v39, %v978_v39  ;;  %v419_v41 = vpop.f32.mrb[1].mxu0 }
  0xf1   : > { %578 = vst [vmem:[%s1382_s28] sm:$0xff] %v419_v41  ;;  %v610_v42 = vadd.f32 %v978_v39, %v419_v41  ;;  %v648_v43 = vmul.f32 %v419_v41, %v419_v41  ;;  %v1386_v44 = vpop.f32.mrb[0].mxu1 }
  0xf2   : > { %595 = vst [vmem:[%s1382_s28 + $0x88] sm:$0xff] %v1386_v44  ;;  %v1390_v45 = vpop.f32.mrb[1].mxu1 }
  0xf3   : > { %v680_v46 = vadd.f32 %v649_v40, %v648_v43  ;;  %v981_v47 = vpop.f32.mrb[2].mxu0  ;;  %594 = vst [vmem:[%s1382_s28 + $0x80] sm:$0xff] %v1390_v45 }
  0xf4   : > { %581 = vst [vmem:[%s1382_s28 + $0x18] sm:$0xff] %v981_v47  ;;  %v429_v48 = vpop.f32.mrb[3].mxu0  ;;  %v651_v53 = vmul.f32 %v981_v47, %v981_v47 }
  0xf5   : > { %580 = vst [vmem:[%s1382_s28 + $0x10] sm:$0xff] %v429_v48  ;;  %v611_v49 = vadd.f32 %v610_v42, %v429_v48  ;;  %v650_v50 = vmul.f32 %v429_v48, %v429_v48  ;;  %v1396_v51 = vpop.f32.mrb[2].mxu1 }
  0xf6   : > { %597 = vst [vmem:[%s1382_s28 + $0x98] sm:$0xff] %v1396_v51  ;;  %v1400_v52 = vpop.f32.mrb[3].mxu1 }
  0xf7   : > { %v681_v54 = vadd.f32 %v680_v46, %v650_v50  ;;  %v984_v55 = vpop.f32.mrb[4].mxu0  ;;  %v612_v56 = vadd.f32 %v981_v47, %v611_v49  ;;  %596 = vst [vmem:[%s1382_s28 + $0x90] sm:$0xff] %v1400_v52 }
  0xf8   : > { %583 = vst [vmem:[%s1382_s28 + $0x28] sm:$0xff] %v984_v55  ;;  %v439_v57 = vpop.f32.mrb[5].mxu0  ;;  %v653_v63 = vmul.f32 %v984_v55, %v984_v55 }
  0xf9   : > { %582 = vst [vmem:[%s1382_s28 + $0x20] sm:$0xff] %v439_v57  ;;  %v613_v58 = vadd.f32 %v612_v56, %v439_v57  ;;  %v652_v59 = vmul.f32 %v439_v57, %v439_v57  ;;  %v682_v60 = vadd.f32 %v681_v54, %v651_v53  ;;  %v1406_v61 = vpop.f32.mrb[4].mxu1  ;;  %v664_v56 = vmul.f32 %v1390_v45, %v1390_v45 }
  0xfa   : > { %599 = vst [vmem:[%s1382_s28 + $0xa8] sm:$0xff] %v1406_v61  ;;  %v1410_v62 = vpop.f32.mrb[5].mxu1 }
  0xfb   : > { %v683_v0 = vadd.f32 %v682_v60, %v652_v59  ;;  %v987_v1 = vpop.f32.mrb[6].mxu0  ;;  %v614_v2 = vadd.f32 %v984_v55, %v613_v58  ;;  %598 = vst [vmem:[%s1382_s28 + $0xa0] sm:$0xff] %v1410_v62 }
  0xfc   : > { %585 = vst [vmem:[%s1382_s28 + $0x38] sm:$0xff] %v987_v1  ;;  %v449_v3 = vpop.f32.mrb[7].mxu0  ;;  %v655_v9 = vmul.f32 %v987_v1, %v987_v1 }
  0xfd   : > { %584 = vst [vmem:[%s1382_s28 + $0x30] sm:$0xff] %v449_v3  ;;  %v615_v4 = vadd.f32 %v614_v2, %v449_v3  ;;  %v654_v5 = vmul.f32 %v449_v3, %v449_v3  ;;  %v684_v6 = vadd.f32 %v683_v0, %v653_v63  ;;  %v1416_v7 = vpop.f32.mrb[6].mxu1 }
  0xfe   : > { %601 = vst [vmem:[%s1382_s28 + $0xb8] sm:$0xff] %v1416_v7  ;;  %v1420_v8 = vpop.f32.mrb[7].mxu1 }
  0xff   : > { %v685_v10 = vadd.f32 %v684_v6, %v654_v5  ;;  %v990_v11 = vpop.f32.mrb[8].mxu0  ;;  %v616_v12 = vadd.f32 %v987_v1, %v615_v4  ;;  %600 = vst [vmem:[%s1382_s28 + $0xb0] sm:$0xff] %v1420_v8 }
 0x100   : > { %587 = vst [vmem:[%s1382_s28 + $0x48] sm:$0xff] %v990_v11  ;;  %v459_v13 = vpop.f32.mrb[9].mxu0  ;;  %v657_v19 = vmul.f32 %v990_v11, %v990_v11 }
 0x101   : > { %586 = vst [vmem:[%s1382_s28 + $0x40] sm:$0xff] %v459_v13  ;;  %v617_v14 = vadd.f32 %v616_v12, %v459_v13  ;;  %v656_v15 = vmul.f32 %v459_v13, %v459_v13  ;;  %v686_v16 = vadd.f32 %v685_v10, %v655_v9  ;;  %v1426_v17 = vpop.f32.mrb[8].mxu1 }
 0x102   : > { %603 = vst [vmem:[%s1382_s28 + $0xc8] sm:$0xff] %v1426_v17  ;;  %v1430_v18 = vpop.f32.mrb[9].mxu1 }
 0x103   : > { %v687_v20 = vadd.f32 %v686_v16, %v656_v15  ;;  %v993_v21 = vpop.f32.mrb[10].mxu0  ;;  %v618_v22 = vadd.f32 %v990_v11, %v617_v14  ;;  %602 = vst [vmem:[%s1382_s28 + $0xc0] sm:$0xff] %v1430_v18 }
 0x104   : > { %589 = vst [vmem:[%s1382_s28 + $0x58] sm:$0xff] %v993_v21  ;;  %v469_v23 = vpop.f32.mrb[11].mxu0  ;;  %v659_v29 = vmul.f32 %v993_v21, %v993_v21 }
 0x105   : > { %588 = vst [vmem:[%s1382_s28 + $0x50] sm:$0xff] %v469_v23  ;;  %v619_v24 = vadd.f32 %v618_v22, %v469_v23  ;;  %v658_v25 = vmul.f32 %v469_v23, %v469_v23  ;;  %v688_v26 = vadd.f32 %v687_v20, %v657_v19  ;;  %v1436_v27 = vpop.f32.mrb[10].mxu1 }
 0x106   : > { %605 = vst [vmem:[%s1382_s28 + $0xd8] sm:$0xff] %v1436_v27  ;;  %v1440_v28 = vpop.f32.mrb[11].mxu1 }
 0x107   : > { %v689_v30 = vadd.f32 %v688_v26, %v658_v25  ;;  %v996_v31 = vpop.f32.mrb[12].mxu0  ;;  %v620_v32 = vadd.f32 %v993_v21, %v619_v24  ;;  %604 = vst [vmem:[%s1382_s28 + $0xd0] sm:$0xff] %v1440_v28 }
 0x108   : > { %591 = vst [vmem:[%s1382_s28 + $0x68] sm:$0xff] %v996_v31  ;;  %v479_v33 = vpop.f32.mrb[13].mxu0  ;;  %v661_v39 = vmul.f32 %v996_v31, %v996_v31 }
 0x109   : > { %590 = vst [vmem:[%s1382_s28 + $0x60] sm:$0xff] %v479_v33  ;;  %v621_v34 = vadd.f32 %v620_v32, %v479_v33  ;;  %v660_v35 = vmul.f32 %v479_v33, %v479_v33  ;;  %v690_v36 = vadd.f32 %v689_v30, %v659_v29  ;;  %v1446_v37 = vpop.f32.mrb[12].mxu1 }
 0x10a   : > { %607 = vst [vmem:[%s1382_s28 + $0xe8] sm:$0xff] %v1446_v37  ;;  %v1452_v38 = vpop.f32.mrb[13].mxu1 }
 0x10b   : > { %v691_v40 = vadd.f32 %v690_v36, %v660_v35  ;;  %v999_v41 = vpop.f32.mrb[14].mxu0  ;;  %v622_v42 = vadd.f32 %v996_v31, %v621_v34  ;;  %606 = vst [vmem:[%s1382_s28 + $0xe0] sm:$0xff] %v1452_v38 }
 0x10c   : > { %593 = vst [vmem:[%s1382_s28 + $0x78] sm:$0xff] %v999_v41  ;;  %v489_v43 = vpop.f32.mrb[15].mxu0  ;;  %v663_v53 = vmul.f32 %v999_v41, %v999_v41 }
 0x10d   : > { %592 = vst [vmem:[%s1382_s28 + $0x70] sm:$0xff] %v489_v43  ;;  %v623_v46 = vadd.f32 %v622_v42, %v489_v43  ;;  %v662_v47 = vmul.f32 %v489_v43, %v489_v43  ;;  %v692_v48 = vadd.f32 %v691_v40, %v661_v39  ;;  %v1465_v49 = vpop.f32.mrb[14].mxu1 }
 0x10e   : > { %609 = vst [vmem:[%s1382_s28 + $0xf8] sm:$0xff] %v1465_v49  ;;  %v1469_v50 = vpop.f32.mrb[15].mxu1 }
 0x10f   : > { %v624_v54 = vadd.f32 %v999_v41, %v623_v46  ;;  %v693_v55 = vadd.f32 %v692_v48, %v662_v47  ;;  %608 = vst [vmem:[%s1382_s28 + $0xf0] sm:$0xff] %v1469_v50 }
 0x110   : > { %1102 = shalt.err (!%p1099_p3)
}
 0x111   : > { %s1103_s13 = scalar_lea.hbm %s1460_s7, 4096  ;;  %s1107_s27 = scalar_lea.hbm %s1634_s2, 8192 }
 0x112   : > { %p1104_p4 = scmp.ne.s32.totalorder %s1460_s7, %s1103_s13  ;;  %p1108_p9 = scmp.lt.u32.totalorder %s1460_s7, %s1634_s2 }
 0x113   : > { %p1109_p10 = scmp.lt.u32.totalorder %s1107_s27, %s1103_s13  ;;  %p1111_p12 = scmp.lt.u32.totalorder %s1103_s13, %s1460_s7 }
 0x114   : > { %p1105_p7 = pnand %p1104_p4, %p1283_p5 }
 0x115   : > { %p1110_p11 = por %p1109_p10, %p1108_p9 }
 0x116   : > { %p1106_p8 = pneg %p1105_p7 }
 0x117   : > { %p1112_p13 = por %p1111_p12, %p1110_p11 }
 0x119   : > { %p1113_p0 = pnand %p1112_p13, %p1106_p8 }
 0x11b   : > { %1116 = shalt.err (!%p1113_p0)
}
 0x11c   : > { %s1214_s5 = smov 128   ;;  %s1215_s6 = smov 8   ;;  %v694_v57 = vadd.f32 %v693_v55, %v663_v53  ;;  %v625_v58 = vadd.f32 %v624_v54, %v1390_v45  ;;  %v665_v59 = vmul.f32 %v1386_v44, %v1386_v44  ;;  %v666_v0 = vmul.f32 %v1400_v52, %v1400_v52 }
 0x11d   : > { %1038 = dma.vmem_to_hbm [thread:$0]  (%p1283_p5), %s1462_s30, 4096, %s1460_s7, %s719_s8, %s1214_s5, %s1214_s5, %s1215_s6   ;;  %v667_v3 = vmul.f32 %v1396_v51, %v1396_v51  ;;  %v668_v45 = vmul.f32 %v1410_v62, %v1410_v62  ;;  %v678_v31 = vmul.f32 %v1469_v50, %v1469_v50  ;;  %v679_v33 = vmul.f32 %v1465_v49, %v1465_v49 }
 0x11e   : > { %v695_v60 = vadd.f32 %v694_v57, %v664_v56  ;;  %v626_v63 = vadd.f32 %v1386_v44, %v625_v58  ;;  %v669_v44 = vmul.f32 %v1406_v61, %v1406_v61  ;;  %s723_s30 = sand.u32 1, %s1264_s19   ;;  %s924_s7 = sshll.u32 %s1264_s19, 4 }
 0x11f   : > { %s201_s8 = scalar_lea.vmem [#allocation4], %s1379_s23  ;;  %s207_s10 = scalar_lea.vmem [#allocation6], %s1379_s23 }
 0x120   : > { %v627_v1 = vadd.f32 %v626_v63, %v1400_v52  ;;  %v696_v2 = vadd.f32 %v695_v60, %v665_v59  ;;  %v670_v52 = vmul.f32 %v1420_v8, %v1420_v8  ;;  %s756_s9 = sshll.u32 %s201_s8, 4  ;;  %s769_s11 = sshll.u32 %s207_s10, 4  ;;  %s1556_s9 = int_to_ptr.vmem [resolvable:$true] %s756_s9  ;;  %s1563_s11 = int_to_ptr.vmem [resolvable:$true] %s769_s11 }
 0x121   : > { %s1554_s14 = scalar_lea.hbm %s1635_s3, %s924_s7  ;;  %s1561_s27 = scalar_lea.hbm %s1636_s4, %s924_s7 }
 0x122   : > { %v697_v4 = vadd.f32 %v696_v2, %v666_v0  ;;  %v628_v5 = vadd.f32 %v1396_v51, %v627_v1  ;;  %v671_v51 = vmul.f32 %v1416_v7, %v1416_v7  ;;  %s1565_s28 = scalar_lea.sflag [#allocation5], %s723_s30  ;;  %s1117_s29 = scalar_lea.vmem %s1556_s9, 16 }
 0x123   : > { %p1118_p1 = scmp.ne.s32.totalorder %s1556_s9, %s1117_s29  ;;  %s1216_s5 = smov [#allocation4]  }
 0x124   : > { %v629_v6 = vadd.f32 %v628_v5, %v1410_v62  ;;  %v698_v9 = vadd.f32 %v697_v4, %v667_v3  ;;  %v672_v62 = vmul.f32 %v1430_v18, %v1430_v18  ;;  %s1121_s6 = sshll.u32 %s1216_s5, 4  ;;  %s1122_s6 = int_to_ptr.vmem [resolvable:$false] %s1121_s6 }
 0x125   : > { %p1119_p2 = pnand %p1118_p1, %p1283_p5  ;;  %s1123_s12 = scalar_lea.vmem %s1122_s6, 32 }
 0x126   : > { %v699_v10 = vadd.f32 %v698_v9, %v668_v45  ;;  %v630_v11 = vadd.f32 %v1406_v61, %v629_v6  ;;  %v673_v61 = vmul.f32 %v1426_v17, %v1426_v17  ;;  %p1124_p4 = scmp.lt.s32.totalorder %s1556_s9, %s1122_s6  ;;  %p1125_p7 = scmp.lt.s32.totalorder %s1123_s12, %s1117_s29 }
 0x127   : > { %p1120_p3 = pneg %p1119_p2 }
 0x128   : > { %v631_v12 = vadd.f32 %v630_v11, %v1420_v8  ;;  %v700_v13 = vadd.f32 %v699_v10, %v669_v44  ;;  %v674_v8 = vmul.f32 %v1440_v28, %v1440_v28  ;;  %p1126_p8 = por %p1125_p7, %p1124_p4 }
 0x12a   : > { %v701_v14 = vadd.f32 %v700_v13, %v670_v52  ;;  %v632_v15 = vadd.f32 %v1416_v7, %v631_v12  ;;  %v675_v7 = vmul.f32 %v1436_v27, %v1436_v27  ;;  %p1127_p9 = pnand %p1126_p8, %p1120_p3 }
 0x12c   : > { %v633_v16 = vadd.f32 %v632_v15, %v1430_v18  ;;  %v702_v19 = vadd.f32 %v701_v14, %v671_v51  ;;  %v676_v18 = vmul.f32 %v1452_v38, %v1452_v38 }
 0x12e   : > { %v703_v20 = vadd.f32 %v702_v19, %v672_v62  ;;  %v634_v21 = vadd.f32 %v1426_v17, %v633_v16  ;;  %v677_v17 = vmul.f32 %v1446_v37, %v1446_v37 }
 0x130   : > { %v635_v22 = vadd.f32 %v634_v21, %v1440_v28  ;;  %v704_v23 = vadd.f32 %v703_v20, %v673_v61 }
 0x132   : > { %v705_v24 = vadd.f32 %v704_v23, %v674_v8  ;;  %v636_v25 = vadd.f32 %v1436_v27, %v635_v22 }
 0x134   : > { %v637_v26 = vadd.f32 %v636_v25, %v1452_v38  ;;  %v706_v29 = vadd.f32 %v705_v24, %v675_v7 }
 0x136   : > { %v707_v30 = vadd.f32 %v706_v29, %v676_v18  ;;  %v638_v28 = vadd.f32 %v1446_v37, %v637_v26 }
 0x138   : > { %v639_v27 = vadd.f32 %v638_v28, %v1469_v50  ;;  %v708_v32 = vadd.f32 %v707_v30, %v677_v17 }
 0x13a   : > { %v640_v34 = vadd.f32 %v1465_v49, %v639_v27  ;;  %v709_v35 = vadd.f32 %v708_v32, %v678_v31 }
 0x13c   : > { %v641_v36 = vrot.slane %v640_v34, 4  ;;  %v710_v38 = vadd.f32 %v709_v35, %v679_v33 }
 0x13e   : > { %v642_v39 = vadd.f32 %v641_v36, %v640_v34  ;;  %v711_v37 = vrot.slane %v710_v38, 4 }
 0x140   : > { %v643_v40 = vrot.slane %v642_v39, 2  ;;  %v712_v41 = vadd.f32 %v711_v37, %v710_v38 }
 0x142   : > { %v713_v42 = vrot.slane %v712_v41, 2  ;;  %v644_v43 = vadd.f32 %v643_v40, %v642_v39 }
 0x144   : > { %v645_v46 = vrot.slane %v644_v43, 1  ;;  %v714_v47 = vadd.f32 %v713_v42, %v712_v41 }
 0x146   : > { %v646_v48 = vadd.f32 %v645_v46, %v644_v43  ;;  %v715_v49 = vrot.slane %v714_v47, 1 }
 0x148   : > { %647 = vst [vmem:[%s201_s8] sm:$0x1] %v646_v48  ;;  %v716_v50 = vadd.f32 %v715_v49, %v714_v47 }
 0x149   : > { %1130 = shalt.err (!%p1127_p9)
}
 0x14a   : > { %s1131_s30 = scalar_lea.hbm %s1554_s14, 16  ;;  %s1135_s13 = scalar_lea.hbm %s1635_s3, 32 }
 0x14b   : > { %p1132_p10 = scmp.ne.s32.totalorder %s1554_s14, %s1131_s30  ;;  %p1136_p13 = scmp.lt.u32.totalorder %s1554_s14, %s1635_s3 }
 0x14c   : > { %p1137_p0 = scmp.lt.u32.totalorder %s1135_s13, %s1131_s30  ;;  %p1139_p2 = scmp.lt.u32.totalorder %s1131_s30, %s1554_s14 }
 0x14d   : > { %p1133_p11 = pnand %p1132_p10, %p1283_p5 }
 0x14e   : > { %p1138_p1 = por %p1137_p0, %p1136_p13 }
 0x14f   : > { %p1134_p12 = pneg %p1133_p11 }
 0x150   : > { %p1140_p3 = por %p1139_p2, %p1138_p1 }
 0x152   : > { %p1141_p4 = pnand %p1140_p3, %p1134_p12 }
 0x154   : > { %1144 = shalt.err (!%p1141_p4)
}
 0x155   : > { %1039 = dma.vmem_to_hbm [thread:$0]  (%p1283_p5), %s1556_s9, 16, %s1554_s14, %s1565_s28   ;;  %717 = vst [vmem:[%s207_s10] sm:$0x1] %v716_v50 }
 0x156   : > { %s1145_s29 = scalar_lea.vmem %s1563_s11, 16  ;;  %s1217_s5 = smov [#allocation6]  }
 0x157   : > { %p1146_p7 = scmp.ne.s32.totalorder %s1563_s11, %s1145_s29  ;;  %s1149_s6 = sshll.u32 %s1217_s5, 4  ;;  %s1150_s6 = int_to_ptr.vmem [resolvable:$false] %s1149_s6 }
 0x158   : > { %s1151_s12 = scalar_lea.vmem %s1150_s6, 32  ;;  %p1152_p10 = scmp.lt.s32.totalorder %s1563_s11, %s1150_s6 }
 0x159   : > { %p1147_p8 = pnand %p1146_p7, %p1283_p5  ;;  %p1153_p11 = scmp.lt.s32.totalorder %s1151_s12, %s1145_s29 }
 0x15b   : > { %p1148_p9 = pneg %p1147_p8  ;;  %p1154_p12 = por %p1153_p11, %p1152_p10 }
 0x15d   : > { %p1155_p13 = pnand %p1154_p12, %p1148_p9 }
 0x15f   : > { %1158 = shalt.err (!%p1155_p13)
}
 0x160   : > { %s1159_s23 = scalar_lea.hbm %s1561_s27, 16  ;;  %s1163_s14 = scalar_lea.hbm %s1636_s4, 32 }
 0x161   : > { %p1160_p0 = scmp.ne.s32.totalorder %s1561_s27, %s1159_s23  ;;  %p1164_p3 = scmp.lt.u32.totalorder %s1561_s27, %s1636_s4 }
 0x162   : > { %p1165_p4 = scmp.lt.u32.totalorder %s1163_s14, %s1159_s23  ;;  %p1167_p8 = scmp.lt.u32.totalorder %s1159_s23, %s1561_s27 }
 0x163   : > { %p1161_p1 = pnand %p1160_p0, %p1283_p5 }
 0x164   : > { %p1166_p7 = por %p1165_p4, %p1164_p3 }
 0x165   : > { %p1162_p2 = pneg %p1161_p1 }
 0x166   : > { %p1168_p9 = por %p1167_p8, %p1166_p7 }
 0x168   : > { %p1169_p10 = pnand %p1168_p9, %p1162_p2 }
 0x16a   : > { %1172 = shalt.err (!%p1169_p10)
}
 0x16b   : > { %1040 = dma.vmem_to_hbm [thread:$0]  (%p1283_p5), %s1563_s11, 16, %s1561_s27, %s1565_s28  }
 0x16c PF: > { %p1054_p11 = scmp.ge.s32.totalorder %s1211_s18, 2  ;;  %s781_s8 = sand.u32 1, %s1199_s15  }
 0x16d   : > { %s782_s13 = scalar_lea.sflag [#allocation3], %s781_s8 }
 0x16e   : > { %p1045_p12 = pnand %p1054_p11, %p1287_p6 }
 0x170   : > { %1190 = dma.done.wait (!%p1045_p12), %s782_s13, 4096  }
 0x171   : > { %1192 = vsyncadd (!%p1045_p12), %s782_s13, 4294963200  ;;  %s790_s19 = sand.u32 1, %s881_s20  }
 0x172   : > { %s791_s22 = scalar_lea.sflag [#allocation5], %s790_s19 }
 0x173   : > { %1194 = dma.done.wait (!%p1045_p12), %s791_s22, 32  }
 0x174   : > { %1196 = vsyncadd (!%p1045_p12), %s791_s22, 4294967264  ;;  %p18_p5 = scmp.ge.s32.totalorder %s1268_s21, 4   ;;  %s1639_s15 = smov %s1203_s16 }
 0x175   : > { %s1640_s16 = smov %s1207_s17  ;;  %s1641_s17 = smov %s1281_s24 }
 0x176   : > { %s1642_s18 = smov %s1268_s21  ;;  %20 = sbr.rel (!%p18_p5) target bundleno = 5 (0x5), region = 95 }
 0x17d   :  { %803 = vsyncpa [#allocation3], 1 }
 0x17e   :  { %805 = vsyncpa [#allocation3 + $0x1], 1 }
 0x17f   :  { %806 = vsyncpa [#allocation5], 1 }
 0x180   :  { %808 = vsyncpa [#allocation5 + $0x1], 1 }

</bundles_post_ra>
